<compile_context>
chip_gen: v7x
topology: tpu7x:2x2x1
jax: 0.10.0
libtpu: 0.0.40
codegen_flags: <defaults>
</compile_context>

<pallas_src>
import jax
import jax.numpy as jnp
from jax.experimental import pallas as pl
from jax.experimental.pallas import tpu as pltpu


HIDDEN_DIMS = (10, 15, 5)  # fixed by the PyTorch module


def _round_up(x, m):
    return (x + m - 1) // m * m


def mlp_kernel(x_ref, w_ref, b_ref, o_ref):
    """Fused forward pass on one lane-dense batch tile:
       sigmoid(W1 h + b1) -> sigmoid(W2 h + b2) -> relu(W3 h + b3) -> W4 h + b4."""
    h = x_ref[...]                                                   # (P, tile)
    # NOTE: hidden dims are <=15, so these dots barely exercise the MXU; the kernel
    # is overhead / HBM-latency bound, which is why the large batch tile matters.
    h = jax.nn.sigmoid(
        jnp.dot(w_ref[0], h, preferred_element_type=jnp.float32) + b_ref[0])
    h = jax.nn.sigmoid(
        jnp.dot(w_ref[1], h, preferred_element_type=jnp.float32) + b_ref[1])
    h = jnp.maximum(
        jnp.dot(w_ref[2], h, preferred_element_type=jnp.float32) + b_ref[2], 0.0)
    o_ref[...] = (
        jnp.dot(w_ref[3], h, preferred_element_type=jnp.float32) + b_ref[3]
    ).astype(o_ref.dtype)


def mlp_forward(x, params, *, batch_tile=1024):
    """x: (B, num_inputs) float32.
    params: dict with w{1..4} stored (out_features, in_features) and b{1..4} (out_features,)."""
    B, num_inputs = x.shape
    num_outputs = params["w4"].shape[0]

    dims = (num_inputs,) + HIDDEN_DIMS + (num_outputs,)
    P = _round_up(max(dims), 8)                # padded feature (sublane) dim

    # --- pack the 4 layers into one weight slab + one bias slab (zero padded) ---
    w_pack = jnp.zeros((4, P, P), jnp.float32)
    b_pack = jnp.zeros((4, P, 1), jnp.float32)
    for l in range(4):
        w = params[f"w{l + 1}"]
        b = params[f"b{l + 1}"]
        out_f, in_f = w.shape
        w_pack = w_pack.at[l, :out_f, :in_f].set(w)
        b_pack = b_pack.at[l, :out_f, 0].set(b)

    # --- batch goes on the lane axis, padded to a multiple of a 128-aligned tile ---
    tile = _round_up(min(batch_tile, _round_up(B, 128)), 128)
    Bp = _round_up(B, tile)
    x_lane = jnp.zeros((P, Bp), jnp.float32).at[:num_inputs, :B].set(x.T)

    grid = (Bp // tile,)

    flops = 2 * B * sum(a * b for a, b in zip(dims[:-1], dims[1:]))
    cost = pl.CostEstimate(
        flops=flops,
        transcendentals=B * (HIDDEN_DIMS[0] + HIDDEN_DIMS[1]),  # two sigmoid layers
        bytes_accessed=4 * (B * (num_inputs + num_outputs)
                            + w_pack.size + b_pack.size),
    )

    out_pad = pl.pallas_call(
        mlp_kernel,
        out_shape=jax.ShapeDtypeStruct((P, Bp), jnp.float32),
        grid_spec=pltpu.PrefetchScalarGridSpec(
            num_scalar_prefetch=0,
            grid=grid,
            in_specs=[
                pl.BlockSpec((P, tile), lambda i: (0, i)),      # activations (lane-dense)
                pl.BlockSpec((4, P, P), lambda i: (0, 0, 0)),   # packed weights (resident)
                pl.BlockSpec((4, P, 1), lambda i: (0, 0, 0)),   # packed biases  (resident)
            ],
            out_specs=pl.BlockSpec((P, tile), lambda i: (0, i)),
        ),
        compiler_params=pltpu.CompilerParams(
            dimension_semantics=("parallel",)),                 # shards tiles across v7x TCs
        cost_estimate=cost,
    )(x_lane, w_pack, b_pack)

    # Strip feature + batch padding; return (B, num_outputs) like the PyTorch module.
    return out_pad[:num_outputs, :B].T


def init_params(key, num_inputs, num_outputs):
    """Deterministic synthetic init mirroring the PyTorch MLP layer shapes.
    Weights are stored PyTorch-style (out_features, in_features); biases (out_features,)."""
    dims = (num_inputs,) + HIDDEN_DIMS + (num_outputs,)
    params = {}
    for idx, (fan_in, fan_out) in enumerate(zip(dims[:-1], dims[1:]), start=1):
        key, kw, kb = jax.random.split(key, 3)
        bound = 1.0 / float(fan_in) ** 0.5     # torch nn.Linear default range
        params[f"w{idx}"] = jax.random.uniform(
            kw, (fan_out, fan_in), jnp.float32, -bound, bound)
        params[f"b{idx}"] = jax.random.uniform(
            kb, (fan_out,), jnp.float32, -bound, bound)
    return params


def mlp_reference(x, params):
    h = jax.nn.sigmoid(x @ params["w1"].T + params["b1"])
    h = jax.nn.sigmoid(h @ params["w2"].T + params["b2"])
    h = jnp.maximum(h @ params["w3"].T + params["b3"], 0.0)
    return h @ params["w4"].T + params["b4"]


if __name__ == "__main__":
    num_inputs, num_outputs = 4, 3
    batch = 16   # tiny demo batch -> padded to one 128-lane tile, grid=(1,)

    key = jax.random.PRNGKey(0)
    key, kx = jax.random.split(key)
    x = jax.random.normal(kx, (batch, num_inputs), jnp.float32)
    params = init_params(key, num_inputs, num_outputs)

    out = mlp_forward(x, params)
    out = jax.block_until_ready(out)

    ref = mlp_reference(x, params)
    assert out.shape == (batch, num_outputs)
    assert jnp.allclose(out, ref, atol=1e-5, rtol=1e-5)

    print("KERNEL_OK")
</pallas_src>

<mosaic_0001>
module attributes {stable_mosaic.version = 11 : i64} {
  func.func @mlp_kernel(%arg0: i32, %arg1: memref<16x128xf32, #tpu.memory_space<vmem>>, %arg2: memref<4x16x16xf32, #tpu.memory_space<vmem>>, %arg3: memref<4x16x1xf32, #tpu.memory_space<vmem>>, %arg4: memref<16x128xf32, #tpu.memory_space<vmem>>) attributes {dimension_semantics = [#tpu.dimension_semantics<parallel>], iteration_bounds = array<i64: 1>, scalar_prefetch = 0 : i64, scratch_operands = 0 : i64, tpu.core_type = #tpu.core_type<tc>, window_params = [{transform_indices = @transform_0, window_bounds = array<i64: 16, 128>}, {pipeline_mode = #tpu.pipeline_mode<synchronous>, transform_indices = @transform_1, window_bounds = array<i64: 4, 16, 16>}, {pipeline_mode = #tpu.pipeline_mode<synchronous>, transform_indices = @transform_2, window_bounds = array<i64: 4, 16, 1>}, {transform_indices = @transform_3, window_bounds = array<i64: 16, 128>}]} {
    %c0 = arith.constant 0 : index
    %c0_0 = arith.constant 0 : index
    %0 = vector.load %arg1[%c0, %c0_0] : memref<16x128xf32, #tpu.memory_space<vmem>>, vector<16x128xf32>
    %c0_1 = arith.constant 0 : index
    %c0_2 = arith.constant 0 : index
    %c0_3 = arith.constant 0 : index
    %1 = vector.load %arg2[%c0_1, %c0_2, %c0_3] : memref<4x16x16xf32, #tpu.memory_space<vmem>>, vector<1x16x16xf32>
    %2 = vector.shape_cast %1 : vector<1x16x16xf32> to vector<16x16xf32>
    %cst = arith.constant dense<0.000000e+00> : vector<16x128xf32>
    %3 = tpu.matmul %2, %0, %cst {dimension_numbers = #tpu.dot_dimension_numbers<[1], [0], [0], [1], [0, 0, 1, 1], [], []>} : vector<16x16xf32>, vector<16x128xf32>, vector<16x128xf32> -> vector<16x128xf32>
    %c0_4 = arith.constant 0 : index
    %c0_5 = arith.constant 0 : index
    %c0_6 = arith.constant 0 : index
    %4 = vector.load %arg3[%c0_4, %c0_5, %c0_6] : memref<4x16x1xf32, #tpu.memory_space<vmem>>, vector<1x16x1xf32>
    %5 = vector.shape_cast %4 : vector<1x16x1xf32> to vector<16x1xf32>
    %6 = vector.broadcast %5 : vector<16x1xf32> to vector<16x128xf32>
    %7 = arith.addf %3, %6 : vector<16x128xf32>
    %8 = arith.negf %7 : vector<16x128xf32>
    %9 = math.exp %8 : vector<16x128xf32>
    %cst_7 = arith.constant 1.000000e+00 : f32
    %10 = vector.broadcast %cst_7 : f32 to vector<16x128xf32>
    %11 = arith.addf %10, %9 : vector<16x128xf32>
    %12 = arith.divf %10, %11 : vector<16x128xf32>
    %c1 = arith.constant 1 : index
    %c0_8 = arith.constant 0 : index
    %c0_9 = arith.constant 0 : index
    %13 = vector.load %arg2[%c1, %c0_8, %c0_9] : memref<4x16x16xf32, #tpu.memory_space<vmem>>, vector<1x16x16xf32>
    %14 = vector.shape_cast %13 : vector<1x16x16xf32> to vector<16x16xf32>
    %cst_10 = arith.constant dense<0.000000e+00> : vector<16x128xf32>
    %15 = tpu.matmul %14, %12, %cst_10 {dimension_numbers = #tpu.dot_dimension_numbers<[1], [0], [0], [1], [0, 0, 1, 1], [], []>} : vector<16x16xf32>, vector<16x128xf32>, vector<16x128xf32> -> vector<16x128xf32>
    %c1_11 = arith.constant 1 : index
    %c0_12 = arith.constant 0 : index
    %c0_13 = arith.constant 0 : index
    %16 = vector.load %arg3[%c1_11, %c0_12, %c0_13] : memref<4x16x1xf32, #tpu.memory_space<vmem>>, vector<1x16x1xf32>
    %17 = vector.shape_cast %16 : vector<1x16x1xf32> to vector<16x1xf32>
    %18 = vector.broadcast %17 : vector<16x1xf32> to vector<16x128xf32>
    %19 = arith.addf %15, %18 : vector<16x128xf32>
    %20 = arith.negf %19 : vector<16x128xf32>
    %21 = math.exp %20 : vector<16x128xf32>
    %cst_14 = arith.constant 1.000000e+00 : f32
    %22 = vector.broadcast %cst_14 : f32 to vector<16x128xf32>
    %23 = arith.addf %22, %21 : vector<16x128xf32>
    %24 = arith.divf %22, %23 : vector<16x128xf32>
    %c2 = arith.constant 2 : index
    %c0_15 = arith.constant 0 : index
    %c0_16 = arith.constant 0 : index
    %25 = vector.load %arg2[%c2, %c0_15, %c0_16] : memref<4x16x16xf32, #tpu.memory_space<vmem>>, vector<1x16x16xf32>
    %26 = vector.shape_cast %25 : vector<1x16x16xf32> to vector<16x16xf32>
    %cst_17 = arith.constant dense<0.000000e+00> : vector<16x128xf32>
    %27 = tpu.matmul %26, %24, %cst_17 {dimension_numbers = #tpu.dot_dimension_numbers<[1], [0], [0], [1], [0, 0, 1, 1], [], []>} : vector<16x16xf32>, vector<16x128xf32>, vector<16x128xf32> -> vector<16x128xf32>
    %c2_18 = arith.constant 2 : index
    %c0_19 = arith.constant 0 : index
    %c0_20 = arith.constant 0 : index
    %28 = vector.load %arg3[%c2_18, %c0_19, %c0_20] : memref<4x16x1xf32, #tpu.memory_space<vmem>>, vector<1x16x1xf32>
    %29 = vector.shape_cast %28 : vector<1x16x1xf32> to vector<16x1xf32>
    %30 = vector.broadcast %29 : vector<16x1xf32> to vector<16x128xf32>
    %31 = arith.addf %27, %30 : vector<16x128xf32>
    %cst_21 = arith.constant 0.000000e+00 : f32
    %32 = vector.broadcast %cst_21 : f32 to vector<16x128xf32>
    %33 = arith.maximumf %31, %32 : vector<16x128xf32>
    %c3 = arith.constant 3 : index
    %c0_22 = arith.constant 0 : index
    %c0_23 = arith.constant 0 : index
    %34 = vector.load %arg2[%c3, %c0_22, %c0_23] : memref<4x16x16xf32, #tpu.memory_space<vmem>>, vector<1x16x16xf32>
    %35 = vector.shape_cast %34 : vector<1x16x16xf32> to vector<16x16xf32>
    %cst_24 = arith.constant dense<0.000000e+00> : vector<16x128xf32>
    %36 = tpu.matmul %35, %33, %cst_24 {dimension_numbers = #tpu.dot_dimension_numbers<[1], [0], [0], [1], [0, 0, 1, 1], [], []>} : vector<16x16xf32>, vector<16x128xf32>, vector<16x128xf32> -> vector<16x128xf32>
    %c3_25 = arith.constant 3 : index
    %c0_26 = arith.constant 0 : index
    %c0_27 = arith.constant 0 : index
    %37 = vector.load %arg3[%c3_25, %c0_26, %c0_27] : memref<4x16x1xf32, #tpu.memory_space<vmem>>, vector<1x16x1xf32>
    %38 = vector.shape_cast %37 : vector<1x16x1xf32> to vector<16x1xf32>
    %39 = vector.broadcast %38 : vector<16x1xf32> to vector<16x128xf32>
    %40 = arith.addf %36, %39 : vector<16x128xf32>
    %c0_28 = arith.constant 0 : index
    %c0_29 = arith.constant 0 : index
    %41 = vector.load %arg4[%c0_28, %c0_29] : memref<16x128xf32, #tpu.memory_space<vmem>>, vector<16x128xf32>
    tpu.vector_store %arg4[%c0_28, %c0_29], %40 {strides = array<i32>} : memref<16x128xf32, #tpu.memory_space<vmem>>, vector<16x128xf32>,
    return
  }
  func.func @transform_0(%arg0: i32) -> (i32, i32) {
    %c0_i32 = arith.constant 0 : i32
    %c0_i32_0 = arith.constant 0 : i32
    return %c0_i32, %arg0 : i32, i32
  }
  func.func @transform_1(%arg0: i32) -> (i32, i32, i32) {
    %c0_i32 = arith.constant 0 : i32
    %c0_i32_0 = arith.constant 0 : i32
    %c0_i32_1 = arith.constant 0 : i32
    %c0_i32_2 = arith.constant 0 : i32
    return %c0_i32, %c0_i32_0, %c0_i32_1 : i32, i32, i32
  }
  func.func @transform_2(%arg0: i32) -> (i32, i32, i32) {
    %c0_i32 = arith.constant 0 : i32
    %c0_i32_0 = arith.constant 0 : i32
    %c0_i32_1 = arith.constant 0 : i32
    %c0_i32_2 = arith.constant 0 : i32
    return %c0_i32, %c0_i32_0, %c0_i32_1 : i32, i32, i32
  }
  func.func @transform_3(%arg0: i32) -> (i32, i32) {
    %c0_i32 = arith.constant 0 : i32
    %c0_i32_0 = arith.constant 0 : i32
    return %c0_i32, %arg0 : i32, i32
  }
}

</mosaic_0001>

<bundles_post_ra>
// kernel: tpu_custom_call.1
= control target key start
LH: loop header
LB: loop body
LE: loop exit
PB: predicated region body
PF: predicated region fallthrough
CT: control target
= control target key end

     0   :  { %8 = vsyncpa [#allocation3], 0  ;;  %s729_s0 = inlined_call_operand.hbm [shape: f32[16,128], index: 0, kind: input, shape index: {}]   ;;  %s730_s1 = inlined_call_operand.vmem [shape: f32[4,16,16], index: 1, kind: input, shape index: {}]   ;;  %s731_s2 = inlined_call_operand.vmem [shape: f32[4,16,1], index: 2, kind: input, shape index: {}]   ;;  %s732_s3 = inlined_call_operand.hbm [shape: f32[16,128], index: 3, kind: output, shape index: {}]  }
   0x1   :  { %9 = vsyncpa [#allocation4], 0  ;;  %s618_s12 = smov [#allocation2]   ;;  %s570_s16 = scalar_lea.hbm %s729_s0, 256 }
   0x2   :  { %s15_s13 = sshll.u32 %s618_s12, 4  ;;  %p571_p0 = scmp.ne.s32.totalorder %s729_s0, %s570_s16  ;;  %s16_s13 = int_to_ptr.vmem [resolvable:$true] %s15_s13 }
   0x3   :  { %p574_p1 = scmp.lt.u32.totalorder %s570_s16, %s729_s0 }
   0x5   :  { %p576_p2 = pnand %p574_p1, %p571_p0 }
   0x7   :  { %579 = shalt.err (!%p576_p2)
}
   0x8   :  { %s580_s21 = scalar_lea.vmem %s16_s13, 256  ;;  %p585_p4 = scmp.lt.s32.totalorder %s16_s13, %s16_s13 }
   0x9   :  { %p581_p3 = scmp.ne.s32.totalorder %s16_s13, %s580_s21  ;;  %p586_p5 = scmp.lt.s32.totalorder %s580_s21, %s580_s21 }
   0xb   :  { %p587_p6 = por %p586_p5, %p585_p4 }
   0xd   :  { %p588_p7 = pnand %p587_p6, %p581_p3 }
   0xf   :  { %591 = shalt.err (!%p588_p7)
}
  0x10   :  { %s619_s22 = smov 128   ;;  %s620_s23 = smov 8  }
  0x11   :  { %21 = dma.hbm_to_vmem [thread:$0]  %s729_s0, 256, %s16_s13, [#allocation3], %s619_s22, %s619_s22, %s620_s23  }
  0x12   :  { %614 = dma.done.wait [#allocation3], 256  }
  0x13   :  { %615 = vsyncadd [#allocation3], 4294967040  ;;  %v621_v0 = vmov 0   ;;  %vm45_vm0 = vcmask 130048   ;;  %v29_v1 = vld [vmem:[#allocation2] sm:$0xff]  ;;  %v30_v2 = vld [vmem:[#allocation2 + $0x8] sm:$0xff] }
  0x14   :  { %552 = vset.pattern.permute.xlu0 %v621_v0  ;;  %553 = vset.pattern.permute.xlu1 %v621_v0  ;;  %v31_v3 = vld [vmem:[%s730_s1] sm:$0xff]  ;;  %v531_v4 = vpack.c.bf16 %v30_v2, %v29_v1  ;;  %v34_v6 = vld [vmem:[%s731_s2 + $0x8] sm:$0xff]  ;;  %v483_v9 = vld [vmem:[%s731_s2 + $0x30] sm:$0xff]  ;;  %s622_s30 = smov [#allocation5]  }
  0x15   :  { %507 = vmatprep.mubr.msk.f32.mxu0 %vm45_vm0, %v31_v3  ;;  %v33_v5 = vld [vmem:[%s731_s2] sm:$0xff]  ;;  %v32_v7 = vld [vmem:[%s730_s1 + $0x8] sm:$0xff]  ;;  %v467_v10 = vld [vmem:[%s730_s1 + $0x10] sm:$0xff]  ;;  %s451_s4 = sshll.u32 %s622_s30, 4  ;;  %s452_s4 = int_to_ptr.vmem [resolvable:$true] %s451_s4 }
  0x16   :  { %37 = vperm.xlu0 %552, %v33_v5   ;;  %532 = vmatprep.subr.bf16.mxu0 %v531_v4  ;;  %v477_v8 = vld [vmem:[%s731_s2 + $0x20] sm:$0xff]  ;;  %v469_v11 = vld [vmem:[%s731_s2 + $0x10] sm:$0xff]  ;;  %v470_v12 = vld [vmem:[%s731_s2 + $0x18] sm:$0xff]  ;;  %s592_s5 = scalar_lea.vmem %s452_s4, 256  ;;  %p597_p9 = scmp.lt.s32.totalorder %s452_s4, %s452_s4 }
  0x17   :  { %534 = vmatpush3.bf16.msra.mxu0 %v531_v4  ;;  %514 = vmatprep.mubr.msk.f32.mxu1 %vm45_vm0, %v467_v10  ;;  %v478_v13 = vld [vmem:[%s731_s2 + $0x28] sm:$0xff]  ;;  %v484_v14 = vld [vmem:[%s731_s2 + $0x38] sm:$0xff]  ;;  %v475_v31 = vld [vmem:[%s730_s1 + $0x20] sm:$0xff]  ;;  %p593_p8 = scmp.ne.s32.totalorder %s452_s4, %s592_s5  ;;  %p598_p10 = scmp.lt.s32.totalorder %s592_s5, %s592_s5 }
  0x18   :  { %147 = vperm.xlu1 %553, %v469_v11   ;;  %v468_v30 = vld [vmem:[%s730_s1 + $0x18] sm:$0xff]  ;;  %v476_v47 = vld [vmem:[%s730_s1 + $0x28] sm:$0xff]  ;;  %v481_v48 = vld [vmem:[%s730_s1 + $0x30] sm:$0xff] }
  0x19   :  { %v482_v58 = vld [vmem:[%s730_s1 + $0x38] sm:$0xff]  ;;  %p599_p11 = por %p598_p10, %p597_p9 }
  0x1a   :  { %42 = vperm.xlu0 %552, %v34_v6   ;;  %508 = vmatmul.mubr.msk.f32.vlgmr.msra.gmra.mrb[0].mxu0 %vm45_vm0, %v32_v7 }
  0x1b   :  { %521 = vmatprep.mubr.msk.f32.mxu0 %vm45_vm0, %v475_v31  ;;  %p600_p12 = pnand %p599_p11, %p593_p8 }
  0x1c   :  { %152 = vperm.xlu1 %553, %v470_v12  }
  0x1e   :  { %256 = vperm.xlu0 %552, %v477_v8  }
  0x20   :  { %261 = vperm.xlu1 %553, %v478_v13  }
  0x22   :  { %355 = vperm.xlu0 %552, %v483_v9  }
  0x24   :  { %360 = vperm.xlu1 %553, %v484_v14  }
  0x95   :  { %v38_v15 = vpop.permute.xlu0 %37 }
  0x97   :  { %v148_v32 = vpop.permute.xlu1 %147 }
  0x99   :  { %v43_v16 = vpop.permute.xlu0 %42 }
  0x9b   :  { %v153_v33 = vpop.permute.xlu1 %152 }
  0x9d   :  { %v257_v51 = vpop.permute.xlu0 %256 }
  0x9f   :  { %v262_v49 = vpop.permute.xlu1 %261 }
  0xa1   :  { %v356_v61 = vpop.permute.xlu0 %355 }
  0xa3   :  { %v361_v59 = vpop.permute.xlu1 %360 }
  0xed   :  { %v509_v17 = vpop.f32.mrb[0].mxu0 }
  0xee   :  { %v124_v18 = vadd.f32 %v509_v17, %v43_v16  ;;  %v118_v19 = vpop.f32.mrb[1].mxu0 }
  0xef   :  { %v119_v20 = vadd.f32 %v118_v19, %v38_v15 }
  0xf0   :  { %v466_v21 = vmul.f32 -1.442695, %v124_v18 }
  0xf1   :  { %v465_v22 = vmul.f32 -1.442695, %v119_v20 }
  0xf2   :  { %554 = vpow2.f32 %v466_v21 }
  0xf3   :  { %556 = vpow2.f32 %v465_v22 }
  0xfc   :  { %v555_v23 = vpop.eup %554 }
  0xfd   :  { %v557_v24 = vpop.eup %556  ;;  %v134_v25 = vadd.f32 1.0, %v555_v23 }
  0xfe   :  { %v133_v26 = vadd.f32 1.0, %v557_v24 }
  0xff   :  { %558 = vrcp.f32 %v134_v25 }
 0x100   :  { %560 = vrcp.f32 %v133_v26 }
 0x109   :  { %v559_v27 = vpop.eup %558 }
 0x10a   :  { %v561_v28 = vpop.eup %560 }
 0x10b   :  { %v535_v29 = vpack.c.bf16 %v559_v27, %v561_v28 }
 0x10d   :  { %536 = vmatprep.subr.bf16.mxu1 %v535_v29 }
 0x10e   :  { %538 = vmatpush3.bf16.msra.mxu1 %v535_v29 }
 0x111   :  { %515 = vmatmul.mubr.msk.f32.vlgmr.msra.gmra.mrb[0].mxu1 %vm45_vm0, %v468_v30 }
 0x112   :  { %528 = vmatprep.mubr.msk.f32.mxu1 %vm45_vm0, %v481_v48 }
 0x1e4   :  { %v516_v34 = vpop.f32.mrb[0].mxu1 }
 0x1e5   :  { %v233_v35 = vadd.f32 %v516_v34, %v153_v33  ;;  %v227_v36 = vpop.f32.mrb[1].mxu1 }
 0x1e6   :  { %v228_v37 = vadd.f32 %v227_v36, %v148_v32 }
 0x1e7   :  { %v474_v38 = vmul.f32 -1.442695, %v233_v35 }
 0x1e8   :  { %v473_v39 = vmul.f32 -1.442695, %v228_v37 }
 0x1e9   :  { %562 = vpow2.f32 %v474_v38 }
 0x1ea   :  { %564 = vpow2.f32 %v473_v39 }
 0x1f3   :  { %v563_v40 = vpop.eup %562 }
 0x1f4   :  { %v565_v41 = vpop.eup %564  ;;  %v243_v42 = vadd.f32 1.0, %v563_v40 }
 0x1f5   :  { %v242_v43 = vadd.f32 1.0, %v565_v41 }
 0x1f6   :  { %566 = vrcp.f32 %v243_v42 }
 0x1f7   :  { %568 = vrcp.f32 %v242_v43 }
 0x200   :  { %v567_v44 = vpop.eup %566 }
 0x201   :  { %v569_v45 = vpop.eup %568 }
 0x202   :  { %v539_v46 = vpack.c.bf16 %v567_v44, %v569_v45 }
 0x204   :  { %540 = vmatprep.subr.bf16.mxu0 %v539_v46 }
 0x205   :  { %542 = vmatpush3.bf16.msra.mxu0 %v539_v46 }
 0x208   :  { %522 = vmatmul.mubr.msk.f32.vlgmr.msra.gmra.mrb[2].mxu0 %vm45_vm0, %v476_v47 }
 0x2db   :  { %v523_v50 = vpop.f32.mrb[2].mxu0 }
 0x2dc   :  { %v342_v52 = vadd.f32 %v523_v50, %v262_v49  ;;  %v336_v53 = vpop.f32.mrb[3].mxu0 }
 0x2dd   :  { %v337_v54 = vadd.f32 %v336_v53, %v257_v51 }
 0x2de   :  { %v346_v55 = vmax.f32 %v342_v52, 0.0 }
 0x2df   :  { %v345_v56 = vmax.f32 %v337_v54, 0.0 }
 0x2e1   :  { %v543_v57 = vpack.c.bf16 %v346_v55, %v345_v56 }
 0x2e3   :  { %544 = vmatprep.subr.bf16.mxu1 %v543_v57 }
 0x2e4   :  { %546 = vmatpush3.bf16.msra.mxu1 %v543_v57 }
 0x2e7   :  { %529 = vmatmul.mubr.msk.f32.vlgmr.msra.gmra.mrb[2].mxu1 %vm45_vm0, %v482_v58 }
 0x3ba   :  { %v530_v60 = vpop.f32.mrb[2].mxu1 }
 0x3bb   :  { %v441_v62 = vadd.f32 %v530_v60, %v361_v59  ;;  %v435_v63 = vpop.f32.mrb[3].mxu1 }
 0x3bc   :  { %v436_v0 = vadd.f32 %v435_v63, %v356_v61 }
 0x3bd   :  { %445 = vst [vmem:[#allocation5 + $0x8] sm:$0xff] %v441_v62 }
 0x3be   :  { %444 = vst [vmem:[#allocation5] sm:$0xff] %v436_v0 }
 0x3bf   :  { %603 = shalt.err (!%p600_p12)
}
 0x3c0   :  { %s604_s7 = scalar_lea.hbm %s732_s3, 256 }
 0x3c1   :  { %p605_p13 = scmp.ne.s32.totalorder %s732_s3, %s604_s7  ;;  %p608_p0 = scmp.lt.u32.totalorder %s604_s7, %s732_s3 }
 0x3c3   :  { %p610_p1 = pnand %p608_p0, %p605_p13 }
 0x3c5   :  { %613 = shalt.err (!%p610_p1)
}
 0x3c6   :  { %457 = dma.vmem_to_hbm [thread:$0]  %s452_s4, 256, %s732_s3, [#allocation4], %s619_s22, %s619_s22, %s620_s23  }
 0x3c7   :  { %616 = dma.done.wait [#allocation4], 256  }
 0x3c8   :  { %617 = vsyncadd [#allocation4], 4294967040 }
 0x3c9   :  { %461 = vsyncpa [#allocation3], 1 }
 0x3ca   :  { %462 = vsyncpa [#allocation4], 1 }

</bundles_post_ra>
